<compile_context>
chip_gen: v5e
topology: v5e:2x2
jax: 0.10.0
libtpu: 0.0.40
codegen_flags: <defaults>
</compile_context>

<pallas_src>
import functools
import math

import jax
import jax.numpy as jnp
import numpy as np
from jax.experimental import pallas as pl
from jax.experimental.pallas import tpu as pltpu

_SQRT_HALF = np.float32(math.sqrt(0.5))


def _round_up(x, m):
    return ((x + m - 1) // m) * m


def _choose_tile_t(T, P, requested):
    """Largest time tile dividing T that is a multiple of 16, <= requested, >= P."""
    if T % 16 != 0:
        raise ValueError(f"T={T} must be a multiple of 16")
    hi = min(requested, T)
    hi -= hi % 16
    for cand in range(hi, 15, -16):
        if T % cand == 0 and cand >= P:
            return cand
    raise ValueError(
        f"no valid time tile for T={T}, halo P={P}, requested tile_t={requested}")


# ---------------------------------------------------------------------------
# Pallas kernel
# ---------------------------------------------------------------------------
def _residual_glu_kernel(
    x_ref,      # (1, tile_T, Cres)        bf16  current residual tile
    halo_ref,   # (1, 1, P, Cres)          bf16  causal halo (last P steps of prev tile)
    c_ref,      # (1, tile_T, Cin)         bf16  local conditioning
    bias_ref,   # (1, 1, G)                f32   conv bias + folded global conditioning
    wg_ref,     # (K*Cres + Cin, G)        bf16  tap weights | local-cond weights
    wos_ref,    # (G//2, Cres + Cskip)     bf16  fused [sqrt(.5)*w_out | w_skip]
    bos_ref,    # (1, Cres + Cskip)        f32   fused [sqrt(.5)*b_out | b_skip]
    o_ref,      # (1, tile_T, Cres+Cskip)  fused (out | skip), lane-dense
    xe_ref,     # (Ppad + tile_T, Cres)    scratch: [pad | halo | tile]
    *, tile_t, P, Ppad, K, dilation, c_res, half,
):
    x_tile = x_ref[0]                                         # (tile_T, Cres) bf16

    # Contiguous [halo | tile] buffer the dilated taps slide over.  Tile store
    # is sublane-aligned (Ppad % 16 == 0); the small halo store may be masked.
    xe_ref[Ppad - P:Ppad, :] = halo_ref[0, 0]
    xe_ref[Ppad:Ppad + tile_t, :] = x_tile

    # Dilated causal conv + conv1x1c as K+1 f32-accumulating MXU matmuls on
    # static views (no unfold buffer, no masked 64-lane slot stores; MXU has
    # plenty of slack at these channel counts).
    gate = jnp.dot(c_ref[0], wg_ref[K * c_res:, :],
                   preferred_element_type=jnp.float32)
    for k in range(K):                                        # K small & static
        off = Ppad - P + k * dilation
        tap = x_tile if k == K - 1 else xe_ref[off:off + tile_t, :]
        gate += jnp.dot(tap, wg_ref[k * c_res:(k + 1) * c_res, :],
                        preferred_element_type=jnp.float32)
    gate += bias_ref[0]                                       # (1, G) f32

    # Gated linear unit (f32). sigmoid(b) == 0.5*tanh(0.5*b)+0.5 -> one EUP op.
    a = gate[:, :half]
    b = gate[:, half:]
    h = jnp.tanh(a) * (0.5 * jnp.tanh(0.5 * b) + 0.5)

    # Fused conv1x1_out + conv1x1_skip in a single matmul (contraction = G//2);
    # residual added in f32 on the VPU (no bf16 identity through the MXU).
    fused = jnp.dot(h.astype(x_tile.dtype), wos_ref[...],
                    preferred_element_type=jnp.float32)
    fused += bos_ref[...]
    out_part = fused[:, :c_res] + x_tile.astype(jnp.float32) * _SQRT_HALF
    o_ref[0] = jnp.concatenate([out_part, fused[:, c_res:]],
                               axis=-1).astype(o_ref.dtype)   # 128-lane dense store


# ---------------------------------------------------------------------------
# Parameter packing (host side, once)
# ---------------------------------------------------------------------------
def pack_params(params_torch, compute_dtype=jnp.bfloat16):
    """Pack PyTorch-layout weights ((O, I, K) convs) into fused kernel layout."""
    f32 = jnp.float32
    scale = _SQRT_HALF

    w_conv = params_torch["w_conv"].astype(f32)               # (G, Cres, K)
    G, Cres, K = w_conv.shape
    w_c = jnp.transpose(params_torch["w_c"][:, :, 0], (1, 0)).astype(f32)   # (Cin, G)
    w_g = jnp.transpose(params_torch["w_g"][:, :, 0], (1, 0)).astype(f32)   # (Cgin, G)
    # taps (K*Cres, G) followed by local-conditioning rows (Cin, G).
    w_gate = jnp.concatenate(
        [jnp.transpose(w_conv, (2, 1, 0)).reshape(K * Cres, G), w_c], axis=0)
    b_gate = params_torch["b_conv"].astype(f32)               # (G,)

    w_out = jnp.transpose(params_torch["w_out"][:, :, 0], (1, 0)).astype(f32)   # (G//2, Cres)
    w_skip = jnp.transpose(params_torch["w_skip"][:, :, 0], (1, 0)).astype(f32) # (G//2, Cskip)
    Cskip = w_skip.shape[1]
    w_os = jnp.concatenate([w_out * scale, w_skip], axis=1)   # (G//2, Cres+Cskip)
    b_os = jnp.concatenate([params_torch["b_out"].astype(f32) * scale,
                            params_torch["b_skip"].astype(f32)])[None, :]

    return {
        "w_gate": w_gate.astype(compute_dtype),
        "b_gate": b_gate,                       # f32 (G,)
        "w_g": w_g,                             # f32 (Cgin, G) — folded in wrapper
        "w_os": w_os.astype(compute_dtype),
        "b_os": b_os,                           # f32 (1, Cres+Cskip)
        "kernel_size": int(K),
        "c_res": int(Cres),
        "c_in": int(params_torch["w_c"].shape[1]),
        "c_gin": int(params_torch["w_g"].shape[1]),
        "c_skip": int(Cskip),
    }


# ---------------------------------------------------------------------------
# Wrappers
# ---------------------------------------------------------------------------
def residual_conv1d_glu_btc(x_btc, c_btc, g_global, packed, *, dilation, tile_t=512):
    """Channels-last (B, T, C) entry point.

    Returns the fused lane-dense (B, T, Cres + Cskip) slab (out | skip).
    Downstream layers should consume it fused (slice via the consumer's
    BlockSpec channel index) to avoid an extra HBM round trip per layer.
    g_global: (B, Cgin) or (B, 1, Cgin) time-constant global conditioning, or None.
    """
    B, T, Cres = x_btc.shape
    Cin = c_btc.shape[-1]
    K = packed["kernel_size"]
    Cskip = packed["c_skip"]
    G = packed["w_gate"].shape[1]
    assert packed["c_res"] == Cres and packed["c_in"] == Cin
    assert K >= 2, "kernel_size must be >= 2"

    P = (K - 1) * dilation
    tile_t = _choose_tile_t(T, P, tile_t)
    nT = T // tile_t
    Ppad = _round_up(P, 16)          # sublane-aligned tile offset in the scratch
    Cout = Cres + Cskip

    # Global conditioning folded into the gate bias once per batch element.
    b_gate = packed["b_gate"]
    if g_global is None:
        gate_bias = jnp.broadcast_to(b_gate[None, None, :], (B, 1, G)).astype(jnp.float32)
    else:
        g2 = g_global.reshape(B, -1).astype(jnp.float32)
        assert g2.shape[1] == packed["c_gin"]
        gate_bias = (b_gate[None, :] + g2 @ packed["w_g"])[:, None, :]

    # Per-tile causal halo: last P steps of the previous tile, zeros for tile 0.
    # Tiny array (P/tile_t of x) built by a cheap XLA fusion; makes every grid
    # step independent so both grid axes can be megacore-parallel.
    if nT > 1:
        tiles = x_btc.reshape(B, nT, tile_t, Cres)
        x_halo = jnp.concatenate(
            [jnp.zeros((B, 1, P, Cres), x_btc.dtype), tiles[:, :-1, tile_t - P:, :]],
            axis=1)
    else:
        x_halo = jnp.zeros((B, 1, P, Cres), x_btc.dtype)

    kernel = functools.partial(
        _residual_glu_kernel, tile_t=tile_t, P=P, Ppad=Ppad, K=K,
        dilation=dilation, c_res=Cres, half=G // 2)

    # Working-set estimate -> explicit scoped-VMEM limit (v5e default is 16 MiB).
    bpe = 2
    est = (2 * (tile_t * (Cres + Cin + Cout) * bpe + P * Cres * bpe + G * 4
                + (K * Cres + Cin) * G * bpe + (G // 2) * Cout * bpe + Cout * 4)
           + (Ppad + tile_t) * Cres * bpe)
    vmem_limit = int(min(max(32 << 20, 4 * est), 60 << 20))

    fused = pl.pallas_call(
        kernel,
        out_shape=jax.ShapeDtypeStruct((B, T, Cout), x_btc.dtype),
        grid_spec=pltpu.PrefetchScalarGridSpec(
            num_scalar_prefetch=0,
            grid=(B, nT),
            in_specs=[
                pl.BlockSpec((1, tile_t, Cres), lambda b, t: (b, t, 0)),
                pl.BlockSpec((1, 1, P, Cres), lambda b, t: (b, t, 0, 0)),
                pl.BlockSpec((1, tile_t, Cin), lambda b, t: (b, t, 0)),
                pl.BlockSpec((1, 1, G), lambda b, t: (b, 0, 0)),
                pl.BlockSpec(packed["w_gate"].shape, lambda b, t: (0, 0)),
                pl.BlockSpec(packed["w_os"].shape, lambda b, t: (0, 0)),
                pl.BlockSpec(packed["b_os"].shape, lambda b, t: (0, 0)),
            ],
            out_specs=pl.BlockSpec((1, tile_t, Cout), lambda b, t: (b, t, 0)),
            scratch_shapes=[pltpu.VMEM((Ppad + tile_t, Cres), x_btc.dtype)],
        ),
        compiler_params=pltpu.CompilerParams(
            dimension_semantics=("parallel", "parallel"),
            vmem_limit_bytes=vmem_limit),
    )(x_btc, x_halo, c_btc, gate_bias,
      packed["w_gate"], packed["w_os"], packed["b_os"])
    return fused


def split_out_skip(fused, c_res):
    """Only for stack edges / testing; prefer consuming the fused slab."""
    return fused[..., :c_res], fused[..., c_res:]


def residual_conv1d_glu(x_nct, c_nct, g_nct, packed, *, dilation, tile_t=512):
    """PyTorch-layout (B, C, T) parity wrapper (test path)."""
    x_btc = jnp.transpose(x_nct, (0, 2, 1))
    c_btc = jnp.transpose(c_nct, (0, 2, 1))
    # Global conditioning is a per-utterance embedding expanded over T.
    g_global = None if g_nct is None else g_nct[:, :, 0]
    fused = residual_conv1d_glu_btc(x_btc, c_btc, g_global, packed,
                                    dilation=dilation, tile_t=tile_t)
    out_btc, skip_btc = split_out_skip(fused, packed["c_res"])
    return jnp.transpose(out_btc, (0, 2, 1)), jnp.transpose(skip_btc, (0, 2, 1))


# ---------------------------------------------------------------------------
# Pure-JAX reference of the PyTorch forward (eval mode)
# ---------------------------------------------------------------------------
def reference_forward(x, c, g, params_torch, *, kernel_size, dilation, causal=True):
    """All tensors in PyTorch (B, C, T) layout; conv weights (O, I, K); f32."""
    T = x.shape[-1]
    padding = (kernel_size - 1) * dilation

    def conv1d(inp, w_oik, bias, pad, dil):
        y = jax.lax.conv_general_dilated(
            inp, w_oik, window_strides=(1,), padding=[(pad, pad)],
            rhs_dilation=(dil,), dimension_numbers=("NCH", "OIH", "NCH"))
        if bias is not None:
            y = y + bias[None, :, None]
        return y

    residual = x
    hg = conv1d(x, params_torch["w_conv"], params_torch["b_conv"], padding, dilation)
    if causal:
        hg = hg[:, :, :T]
    half = hg.shape[1] // 2
    a, b = hg[:, :half, :], hg[:, half:, :]
    cc = conv1d(c, params_torch["w_c"], None, 0, 1)
    a, b = a + cc[:, :half, :], b + cc[:, half:, :]
    gg = conv1d(g, params_torch["w_g"], None, 0, 1)
    a, b = a + gg[:, :half, :], b + gg[:, half:, :]
    h = jnp.tanh(a) * jax.nn.sigmoid(b)
    # Mimic the kernel's bf16 round-trip of h before the 1x1 convs.
    h = h.astype(jnp.bfloat16).astype(jnp.float32)
    s = conv1d(h, params_torch["w_skip"], params_torch["b_skip"], 0, 1)
    o = conv1d(h, params_torch["w_out"], params_torch["b_out"], 0, 1)
    o = (o + residual) * math.sqrt(0.5)
    return o, s


# ---------------------------------------------------------------------------
if __name__ == "__main__":
    def run_case(seed, *, B, T, residual_channels, gate_channels,
                 skip_out_channels, cin_channels, gin_channels,
                 kernel_size, dilation, tile_t):
        key = jax.random.PRNGKey(seed)
        keys = jax.random.split(key, 8)

        def winit(k, shape, fan_in):
            return (jax.random.normal(k, shape, jnp.float32)
                    * np.float32(math.sqrt(2.0 / fan_in)))

        params_torch = {
            "w_conv": winit(keys[0], (gate_channels, residual_channels, kernel_size),
                            residual_channels * kernel_size),
            "b_conv": jnp.zeros((gate_channels,), jnp.float32) + 0.01,
            "w_c": winit(keys[1], (gate_channels, cin_channels, 1), cin_channels),
            "w_g": winit(keys[2], (gate_channels, gin_channels, 1), gin_channels),
            "w_out": winit(keys[3], (residual_channels, gate_channels // 2, 1),
                           gate_channels // 2),
            "b_out": jnp.zeros((residual_channels,), jnp.float32) - 0.02,
            "w_skip": winit(keys[4], (skip_out_channels, gate_channels // 2, 1),
                            gate_channels // 2),
            "b_skip": jnp.zeros((skip_out_channels,), jnp.float32) + 0.03,
        }
        # bf16 compute: round weights/inputs once; kernel and reference consume
        # the same rounded values (f32 accumulation in both paths).
        params_bf = {k: v.astype(jnp.bfloat16) for k, v in params_torch.items()}
        packed = pack_params(params_bf)

        x = jax.random.normal(keys[5], (B, residual_channels, T), jnp.float32)
        c = jax.random.normal(keys[6], (B, cin_channels, T), jnp.float32)
        # Global conditioning: per-utterance embedding expanded over T.
        g0 = jax.random.normal(keys[7], (B, gin_channels, 1), jnp.float32)
        g = jnp.broadcast_to(g0, (B, gin_channels, T))
        x_bf = x.astype(jnp.bfloat16)
        c_bf = c.astype(jnp.bfloat16)
        g_bf = g.astype(jnp.bfloat16)

        out, skip = residual_conv1d_glu(
            x_bf, c_bf, g_bf, packed, dilation=dilation, tile_t=tile_t)
        out = jax.block_until_ready(out)
        skip = jax.block_until_ready(skip)

        f32 = jnp.float32
        out_ref, skip_ref = reference_forward(
            x_bf.astype(f32), c_bf.astype(f32), g_bf.astype(f32),
            {k: v.astype(f32) for k, v in params_bf.items()},
            kernel_size=kernel_size, dilation=dilation)

        np.testing.assert_allclose(np.asarray(out.astype(f32)),
                                   np.asarray(out_ref), atol=5e-2, rtol=5e-2)
        np.testing.assert_allclose(np.asarray(skip.astype(f32)),
                                   np.asarray(skip_ref), atol=5e-2, rtol=5e-2)

    # Case 1: multi-tile with an unaligned halo (P=4, Ppad=16).
    run_case(0, B=2, T=512, residual_channels=64, gate_channels=128,
             skip_out_channels=64, cin_channels=32, gin_channels=16,
             kernel_size=3, dilation=2, tile_t=128)
    # Case 2: single tile (tile_t auto-clamps 512 -> 256), aligned halo (P=16).
    run_case(1, B=2, T=256, residual_channels=64, gate_channels=128,
             skip_out_channels=64, cin_channels=32, gin_channels=16,
             kernel_size=3, dilation=8, tile_t=512)
    # Case 3: halo equal to the whole previous tile (P = tile_t = 128).
    run_case(2, B=2, T=512, residual_channels=64, gate_channels=128,
             skip_out_channels=64, cin_channels=32, gin_channels=16,
             kernel_size=3, dilation=64, tile_t=128)

    print("KERNEL_OK")
</pallas_src>

<mosaic_0001>
module attributes {stable_mosaic.version = 11 : i64} {
  func.func @_residual_glu_kernel(%arg0: i32, %arg1: i32, %arg2: memref<1x128x64xbf16, #tpu.memory_space<vmem>>, %arg3: memref<1x1x4x64xbf16, #tpu.memory_space<vmem>>, %arg4: memref<1x128x32xbf16, #tpu.memory_space<vmem>>, %arg5: memref<1x1x128xf32, #tpu.memory_space<vmem>>, %arg6: memref<224x128xbf16, #tpu.memory_space<vmem>>, %arg7: memref<64x128xbf16, #tpu.memory_space<vmem>>, %arg8: memref<1x128xf32, #tpu.memory_space<vmem>>, %arg9: memref<1x128x128xbf16, #tpu.memory_space<vmem>>, %arg10: memref<144x64xbf16, #tpu.memory_space<vmem>>) attributes {dimension_semantics = [#tpu.dimension_semantics<parallel>, #tpu.dimension_semantics<parallel>], iteration_bounds = array<i64: 2, 4>, scalar_prefetch = 0 : i64, scratch_operands = 1 : i64, tpu.core_type = #tpu.core_type<tc>, window_params = [{transform_indices = @transform_0, window_bounds = array<i64: 1, 128, 64>}, {transform_indices = @transform_1, window_bounds = array<i64: 1, 1, 4, 64>}, {transform_indices = @transform_2, window_bounds = array<i64: 1, 128, 32>}, {transform_indices = @transform_3, window_bounds = array<i64: 1, 1, 128>}, {pipeline_mode = #tpu.pipeline_mode<synchronous>, transform_indices = @transform_4, window_bounds = array<i64: 224, 128>}, {pipeline_mode = #tpu.pipeline_mode<synchronous>, transform_indices = @transform_5, window_bounds = array<i64: 64, 128>}, {pipeline_mode = #tpu.pipeline_mode<synchronous>, transform_indices = @transform_6, window_bounds = array<i64: 1, 128>}, {transform_indices = @transform_7, window_bounds = array<i64: 1, 128, 128>}]} {
    %c0 = arith.constant 0 : index
    %c0_0 = arith.constant 0 : index
    %c0_1 = arith.constant 0 : index
    %0 = vector.load %arg2[%c0, %c0_0, %c0_1] : memref<1x128x64xbf16, #tpu.memory_space<vmem>>, vector<1x128x64xbf16>
    %1 = vector.shape_cast %0 : vector<1x128x64xbf16> to vector<128x64xbf16>
    %c0_2 = arith.constant 0 : index
    %c0_3 = arith.constant 0 : index
    %c0_4 = arith.constant 0 : index
    %c0_5 = arith.constant 0 : index
    %2 = vector.load %arg3[%c0_2, %c0_3, %c0_4, %c0_5] : memref<1x1x4x64xbf16, #tpu.memory_space<vmem>>, vector<1x1x4x64xbf16>
    %3 = vector.shape_cast %2 : vector<1x1x4x64xbf16> to vector<4x64xbf16>
    %c12 = arith.constant 12 : index
    %c0_6 = arith.constant 0 : index
    %4 = vector.load %arg10[%c12, %c0_6] : memref<144x64xbf16, #tpu.memory_space<vmem>>, vector<4x64xbf16>
    tpu.vector_store %arg10[%c12, %c0_6], %3 {strides = array<i32>} : memref<144x64xbf16, #tpu.memory_space<vmem>>, vector<4x64xbf16>,
    %c16 = arith.constant 16 : index
    %c0_7 = arith.constant 0 : index
    %5 = vector.load %arg10[%c16, %c0_7] : memref<144x64xbf16, #tpu.memory_space<vmem>>, vector<128x64xbf16>
    tpu.vector_store %arg10[%c16, %c0_7], %1 {strides = array<i32>} : memref<144x64xbf16, #tpu.memory_space<vmem>>, vector<128x64xbf16>,
    %c0_8 = arith.constant 0 : index
    %c0_9 = arith.constant 0 : index
    %c0_10 = arith.constant 0 : index
    %6 = vector.load %arg4[%c0_8, %c0_9, %c0_10] : memref<1x128x32xbf16, #tpu.memory_space<vmem>>, vector<1x128x32xbf16>
    %7 = vector.shape_cast %6 : vector<1x128x32xbf16> to vector<128x32xbf16>
    %c192 = arith.constant 192 : index
    %c0_11 = arith.constant 0 : index
    %8 = vector.load %arg6[%c192, %c0_11] : memref<224x128xbf16, #tpu.memory_space<vmem>>, vector<32x128xbf16>
    %cst = arith.constant dense<0.000000e+00> : vector<128x128xf32>
    %9 = tpu.matmul %7, %8, %cst {dimension_numbers = #tpu.dot_dimension_numbers<[1], [0], [0], [1], [0, 0, 1, 1], [], []>} : vector<128x32xbf16>, vector<32x128xbf16>, vector<128x128xf32> -> vector<128x128xf32>
    %c12_12 = arith.constant 12 : index
    %c0_13 = arith.constant 0 : index
    %10 = vector.load %arg10[%c12_12, %c0_13] : memref<144x64xbf16, #tpu.memory_space<vmem>>, vector<128x64xbf16>
    %c0_14 = arith.constant 0 : index
    %c0_15 = arith.constant 0 : index
    %11 = vector.load %arg6[%c0_14, %c0_15] : memref<224x128xbf16, #tpu.memory_space<vmem>>, vector<64x128xbf16>
    %cst_16 = arith.constant dense<0.000000e+00> : vector<128x128xf32>
    %12 = tpu.matmul %10, %11, %cst_16 {dimension_numbers = #tpu.dot_dimension_numbers<[1], [0], [0], [1], [0, 0, 1, 1], [], []>} : vector<128x64xbf16>, vector<64x128xbf16>, vector<128x128xf32> -> vector<128x128xf32>
    %13 = arith.addf %9, %12 : vector<128x128xf32>
    %c14 = arith.constant 14 : index
    %c0_17 = arith.constant 0 : index
    %14 = vector.load %arg10[%c14, %c0_17] : memref<144x64xbf16, #tpu.memory_space<vmem>>, vector<128x64xbf16>
    %c64 = arith.constant 64 : index
    %c0_18 = arith.constant 0 : index
    %15 = vector.load %arg6[%c64, %c0_18] : memref<224x128xbf16, #tpu.memory_space<vmem>>, vector<64x128xbf16>
    %cst_19 = arith.constant dense<0.000000e+00> : vector<128x128xf32>
    %16 = tpu.matmul %14, %15, %cst_19 {dimension_numbers = #tpu.dot_dimension_numbers<[1], [0], [0], [1], [0, 0, 1, 1], [], []>} : vector<128x64xbf16>, vector<64x128xbf16>, vector<128x128xf32> -> vector<128x128xf32>
    %17 = arith.addf %13, %16 : vector<128x128xf32>
    %c128 = arith.constant 128 : index
    %c0_20 = arith.constant 0 : index
    %18 = vector.load %arg6[%c128, %c0_20] : memref<224x128xbf16, #tpu.memory_space<vmem>>, vector<64x128xbf16>
    %cst_21 = arith.constant dense<0.000000e+00> : vector<128x128xf32>
    %19 = tpu.matmul %1, %18, %cst_21 {dimension_numbers = #tpu.dot_dimension_numbers<[1], [0], [0], [1], [0, 0, 1, 1], [], []>} : vector<128x64xbf16>, vector<64x128xbf16>, vector<128x128xf32> -> vector<128x128xf32>
    %20 = arith.addf %17, %19 : vector<128x128xf32>
    %c0_22 = arith.constant 0 : index
    %c0_23 = arith.constant 0 : index
    %c0_24 = arith.constant 0 : index
    %21 = vector.load %arg5[%c0_22, %c0_23, %c0_24] : memref<1x1x128xf32, #tpu.memory_space<vmem>>, vector<1x1x128xf32>
    %22 = vector.shape_cast %21 : vector<1x1x128xf32> to vector<1x128xf32>
    %23 = vector.broadcast %22 : vector<1x128xf32> to vector<128x128xf32>
    %24 = arith.addf %20, %23 : vector<128x128xf32>
    %25 = vector.extract_strided_slice %24 {offsets = [0, 0], sizes = [128, 64], strides = [1, 1]} : vector<128x128xf32> to vector<128x64xf32>
    %26 = vector.extract_strided_slice %24 {offsets = [0, 64], sizes = [128, 64], strides = [1, 1]} : vector<128x128xf32> to vector<128x64xf32>
    %27 = math.tanh %25 : vector<128x64xf32>
    %cst_25 = arith.constant 5.000000e-01 : f32
    %28 = vector.broadcast %cst_25 : f32 to vector<128x64xf32>
    %29 = arith.mulf %28, %26 : vector<128x64xf32>
    %30 = math.tanh %29 : vector<128x64xf32>
    %cst_26 = arith.constant 5.000000e-01 : f32
    %31 = vector.broadcast %cst_26 : f32 to vector<128x64xf32>
    %32 = arith.mulf %31, %30 : vector<128x64xf32>
    %cst_27 = arith.constant 5.000000e-01 : f32
    %33 = vector.broadcast %cst_27 : f32 to vector<128x64xf32>
    %34 = arith.addf %32, %33 : vector<128x64xf32>
    %35 = arith.mulf %27, %34 : vector<128x64xf32>
    %36 = arith.truncf %35 : vector<128x64xf32> to vector<128x64xbf16>
    %c0_28 = arith.constant 0 : index
    %c0_29 = arith.constant 0 : index
    %37 = vector.load %arg7[%c0_28, %c0_29] : memref<64x128xbf16, #tpu.memory_space<vmem>>, vector<64x128xbf16>
    %cst_30 = arith.constant dense<0.000000e+00> : vector<128x128xf32>
    %38 = tpu.matmul %36, %37, %cst_30 {dimension_numbers = #tpu.dot_dimension_numbers<[1], [0], [0], [1], [0, 0, 1, 1], [], []>} : vector<128x64xbf16>, vector<64x128xbf16>, vector<128x128xf32> -> vector<128x128xf32>
    %c0_31 = arith.constant 0 : index
    %c0_32 = arith.constant 0 : index
    %39 = vector.load %arg8[%c0_31, %c0_32] : memref<1x128xf32, #tpu.memory_space<vmem>>, vector<1x128xf32>
    %40 = vector.broadcast %39 : vector<1x128xf32> to vector<128x128xf32>
    %41 = arith.addf %38, %40 : vector<128x128xf32>
    %42 = vector.extract_strided_slice %41 {offsets = [0, 0], sizes = [128, 64], strides = [1, 1]} : vector<128x128xf32> to vector<128x64xf32>
    %43 = arith.extf %1 : vector<128x64xbf16> to vector<128x64xf32>
    %cst_33 = arith.constant 0.707106769 : f32
    %44 = vector.broadcast %cst_33 : f32 to vector<128x64xf32>
    %45 = arith.mulf %43, %44 : vector<128x64xf32>
    %46 = arith.addf %42, %45 : vector<128x64xf32>
    %47 = vector.extract_strided_slice %41 {offsets = [0, 64], sizes = [128, 64], strides = [1, 1]} : vector<128x128xf32> to vector<128x64xf32>
    %48 = tpu.concatenate %46, %47 in 1 : vector<128x64xf32>, vector<128x64xf32> -> vector<128x128xf32>
    %49 = arith.truncf %48 : vector<128x128xf32> to vector<128x128xbf16>
    %c0_34 = arith.constant 0 : index
    %c0_35 = arith.constant 0 : index
    %c0_36 = arith.constant 0 : index
    %50 = vector.load %arg9[%c0_34, %c0_35, %c0_36] : memref<1x128x128xbf16, #tpu.memory_space<vmem>>, vector<1x128x128xbf16>
    %51 = vector.shape_cast %50 : vector<1x128x128xbf16> to vector<128x128xbf16>
    %52 = vector.shape_cast %49 : vector<128x128xbf16> to vector<1x128x128xbf16>
    tpu.vector_store %arg9[%c0_34, %c0_35, %c0_36], %52 {strides = array<i32>} : memref<1x128x128xbf16, #tpu.memory_space<vmem>>, vector<1x128x128xbf16>,
    return
  }
  func.func @transform_0(%arg0: i32, %arg1: i32) -> (i32, i32, i32) {
    %c0_i32 = arith.constant 0 : i32
    %c0_i32_0 = arith.constant 0 : i32
    return %arg0, %arg1, %c0_i32 : i32, i32, i32
  }
  func.func @transform_1(%arg0: i32, %arg1: i32) -> (i32, i32, i32, i32) {
    %c0_i32 = arith.constant 0 : i32
    %c0_i32_0 = arith.constant 0 : i32
    %c0_i32_1 = arith.constant 0 : i32
    return %arg0, %arg1, %c0_i32, %c0_i32_0 : i32, i32, i32, i32
  }
  func.func @transform_2(%arg0: i32, %arg1: i32) -> (i32, i32, i32) {
    %c0_i32 = arith.constant 0 : i32
    %c0_i32_0 = arith.constant 0 : i32
    return %arg0, %arg1, %c0_i32 : i32, i32, i32
  }
  func.func @transform_3(%arg0: i32, %arg1: i32) -> (i32, i32, i32) {
    %c0_i32 = arith.constant 0 : i32
    %c0_i32_0 = arith.constant 0 : i32
    %c0_i32_1 = arith.constant 0 : i32
    return %arg0, %c0_i32, %c0_i32_0 : i32, i32, i32
  }
  func.func @transform_4(%arg0: i32, %arg1: i32) -> (i32, i32) {
    %c0_i32 = arith.constant 0 : i32
    %c0_i32_0 = arith.constant 0 : i32
    %c0_i32_1 = arith.constant 0 : i32
    return %c0_i32, %c0_i32_0 : i32, i32
  }
  func.func @transform_5(%arg0: i32, %arg1: i32) -> (i32, i32) {
    %c0_i32 = arith.constant 0 : i32
    %c0_i32_0 = arith.constant 0 : i32
    %c0_i32_1 = arith.constant 0 : i32
    return %c0_i32, %c0_i32_0 : i32, i32
  }
  func.func @transform_6(%arg0: i32, %arg1: i32) -> (i32, i32) {
    %c0_i32 = arith.constant 0 : i32
    %c0_i32_0 = arith.constant 0 : i32
    %c0_i32_1 = arith.constant 0 : i32
    return %c0_i32, %c0_i32_0 : i32, i32
  }
  func.func @transform_7(%arg0: i32, %arg1: i32) -> (i32, i32, i32) {
    %c0_i32 = arith.constant 0 : i32
    %c0_i32_0 = arith.constant 0 : i32
    return %arg0, %arg1, %c0_i32 : i32, i32, i32
  }
}

</mosaic_0001>

<bundles_post_ra>
// kernel: tpu_custom_call.1
= control target key start
LH: loop header
LB: loop body
LE: loop exit
PB: predicated region body
PF: predicated region fallthrough
CT: control target
= control target key end

     0   :  { %12 = vsyncpa [#allocation4], 0  ;;  %s2821_s0 = inlined_call_operand.vmem [shape: bf16[2,512,64], index: 0, kind: input, shape index: {}]   ;;  %s2822_s1 = inlined_call_operand.vmem [shape: bf16[2,4,4,64], index: 1, kind: input, shape index: {}]   ;;  %s2823_s2 = inlined_call_operand.vmem [shape: bf16[2,512,32], index: 2, kind: input, shape index: {}]   ;;  %s2824_s3 = inlined_call_operand.vmem [shape: f32[2,1,128], index: 3, kind: input, shape index: {}]   ;;  %s2825_s4 = inlined_call_operand.vmem [shape: bf16[224,128], index: 4, kind: input, shape index: {}]   ;;  %s2826_s5 = inlined_call_operand.vmem [shape: bf16[64,128], index: 5, kind: input, shape index: {}]   ;;  %s2827_s6 = inlined_call_operand.vmem [shape: f32[1,128], index: 6, kind: input, shape index: {}]   ;;  %s2828_s7 = inlined_call_operand.hbm [shape: bf16[2,512,128], index: 7, kind: output, shape index: {}]  }
   0x1   :  { %14 = vsyncpa [#allocation4 + $0x1], 0  ;;  %s2202_s24 = smov 0   ;;  %s2204_s25 = smov 0  }
   0x2   :  { %s2206_s26 = smov 0   ;;  %s2208_s27 = smov 0  }
   0x3   :  { %s2210_s28 = smov 0   ;;  %s2212_s29 = smov 0  }
   0x4   :  { %s2214_s30 = smov 0   ;;  %s2216_s8 = smov 0  }
   0x5 LB: > { %2835 = sst [smem:[#allocation6_spill]] %s2138_s26  ;;  %s1607_s9 = sadd.s32 4294967295, %s2158_s8   ;;  %s2158_s8 = sphi %s2216_s8, %s20_s8   ;;  %s2154_s30 = sphi %s2214_s30, %s2850_s30   ;;  %s2150_s29 = sphi %s2212_s29, %s2849_s29   ;;  %s2146_s28 = sphi %s2210_s28, %s2848_s28   ;;  %s2142_s27 = sphi %s2208_s27, %s2847_s27   ;;  %s2138_s26 = sphi %s2206_s26, %s2846_s26   ;;  %s2134_s25 = sphi %s2204_s25, %s2852_s25   ;;  %s2130_s24 = sphi %s2202_s24, %s2851_s24  }
   0x6   : > { %2836 = sst [smem:[#allocation7_spill]] %s2150_s29  ;;  %s1608_s10 = sadd.s32 4294967294, %s2158_s8  }
   0x7   : > { %2837 = sst [smem:[#allocation8_spill]] %s2154_s30  ;;  %s29_s11 = sadd.s32 1, %s2150_s29 }
   0x8   : > { %p30_p0 = scmp.ge.s32.totalorder %s29_s11, 4  ;;  %s32_s12 = sadd.s32 1, %s2154_s30 }
   0x9   : > { %p224_p1 = scmp.ne.s32.totalorder %s2138_s26, %s2134_s25  ;;  %p225_p2 = scmp.eq.s32.totalorder %s1607_s9, 7 }
   0xa   : > { %s2854_s11 = smov (%p30_p0, %s29_s11), 0  ;;  %s2856_s12 = smov (!%p30_p0, %s32_s12), %s2154_s30 }
   0xb   : > { %2838 = sst [smem:[#allocation9_spill]] %s2854_s11  ;;  %s210_s13 = ssub.s32 %s2150_s29, %s2854_s11 }
   0xc   : > { %p2253_p3 = por %p225_p2, %p224_p1  ;;  %p34_p4 = scmp.ge.s32.totalorder %s2856_s12, 2 }
   0xd   : > { %p230_p5 = scmp.ne.s32.totalorder %s2134_s25, %s2130_s24  ;;  %p231_p6 = scmp.eq.s32.totalorder %s1608_s10, 7 }
   0xe   : > { %p1611_p7 = scmp.ge.s32.totalorder %s2158_s8, 1  ;;  %s2858_s12 = smov (%p34_p4, %s2856_s12), 0 }
   0xf   : > { %2840 = sst [smem:[#allocation10_spill]] %s2858_s12  ;;  %p2262_p8 = por %p231_p6, %p230_p5 }
  0x10   : > { %p301_p9 = scmp.lt.s32.totalorder %s2158_s8, 9  ;;  %s209_s16 = ssub.s32 %s2154_s30, %s2858_s12 }
  0x11   : > { %s2841_s15 = scalar_select %p2262_p8, 1, 0 }
  0x12   : > { %s214_s17 = sadd.s32 1, %s2138_s26  ;;  %s211_s18 = sor.u32 %s210_s13, %s209_s16 }
  0x13   : > { %2842 = sst [smem:[#allocation11_spill]] %s2841_s15  ;;  %p302_p10 = pnand %p1611_p7, %p301_p9 }
  0x14   : > { %p212_p11 = scmp.eq.s32.totalorder %s211_s18, 0  ;;  %s2277_s22 = sshll.u32 (!%p302_p10), %s2142_s27, 4 }
  0x15   : > { %305 = sbr.rel (%p302_p10) target bundleno = 719 (0x2cf), region = 48  ;;  %p358_p12 = scmp.lt.s32.totalorder (!%p302_p10), %s2146_s28, 1 }
  0x16   : > { %s2271_s19 = scalar_select %p212_p11, %s2138_s26, %s214_s17  }
  0x17   : > { %p360_p13 = scmp.lt.s32.totalorder (!%p302_p10), %s2277_s22, 63  ;;  %p369_p0 = scmp.lt.s32.totalorder (!%p302_p10), %s2142_s27, 3 }
  0x18   : > { %2843 = sst [smem:[#allocation12_spill]] %s2271_s19  ;;  %s1827_s9 = sshll.u32 (!%p302_p10), %s2146_s28, 6 }
  0x1a   : > { %v1848_v0 = vld [vmem:[%s2825_s4 + $0x68] sm:$0xff]  ;;  %v1859_v1 = vld [vmem:[%s2825_s4 + $0x18] sm:$0xff]  ;;  %v1847_v2 = vld [vmem:[%s2825_s4 + $0x60] sm:$0xff]  ;;  %s2289_s16 = scalar_select %p358_p12, %s2146_s28, 1  ;;  %vm687_vm0 = vcmask 261120   ;;  %vm414_vm1 = vcmask 519168  }
  0x1b   : > { %1920 = vmatpush.bf16.msra.mxu2 %v1848_v0  ;;  %590 = vmatpush.bf16.msra.mxu0 %v1859_v1  ;;  %v1858_v3 = vld [vmem:[%s2825_s4 + $0x10] sm:$0xff]  ;;  %s361_s20 = scalar_select %p360_p13, %s2277_s22, 63  ;;  %v1857_v4 = vld [vmem:[%s2825_s4 + $0x8] sm:$0xff]  ;;  %v1856_v10 = vld [vmem:[%s2825_s4] sm:$0xff]  ;;  %vm412_vm2 = vcmask 519170   ;;  %vm519_vm3 = vcmask 1045504  }
  0x1c   : > { %1921 = vmatpush.bf16.msra.mxu3 %v1848_v0  ;;  %1919 = vmatpush.bf16.msra.mxu1 %v1848_v0  ;;  %s1614_s21 = sshll.u32 %s2289_s16, 6  ;;  %s387_s10 = scalar_lea.vmem %s2824_s3, %s2289_s16  ;;  %v1863_v11 = vld [vmem:[%s2825_s4 + $0x38] sm:$0xff]  ;;  %v1862_v16 = vld [vmem:[%s2825_s4 + $0x30] sm:$0xff]  ;;  %v1861_v19 = vld [vmem:[%s2825_s4 + $0x28] sm:$0xff]  ;;  %vm561_vm4 = vcmask 523264   ;;  %vm777_vm5 = vcmask 1044480  }
  0x1d   : > { %s363_s13 = sadd.s32 %s1614_s21, %s361_s20  ;;  %s1616_s17 = sshll.u32 %s2289_s16, 2  ;;  %v1867_v12 = vld [vmem:[%s2825_s4 + $0x58] sm:$0xff]  ;;  %v1866_v17 = vld [vmem:[%s2825_s4 + $0x50] sm:$0xff]  ;;  %v1865_v21 = vld [vmem:[%s2825_s4 + $0x48] sm:$0xff] }
  0x1e   : > { %s1615_s12 = sshll.u32 %s363_s13, 2  ;;  %s2860_s27 = smov (!%p369_p0, %s2142_s27), 3  ;;  %v1860_v23 = vld [vmem:[%s2825_s4 + $0x20] sm:$0xff] }
  0x1f   : > { %1923 = vmatpush.bf16.msra.mxu2 %v1847_v2  ;;  %591 = vmatpush.bf16.msra.mxu0 %v1858_v3  ;;  %s2307_s19 = scalar_lea.vmem %s2821_s0, %s1615_s12  ;;  %s2312_s20 = scalar_lea.vmem %s2823_s2, %s1615_s12  ;;  %v1864_v27 = vld [vmem:[%s2825_s4 + $0x40] sm:$0xff] }
  0x20   : > { %1924 = vmatpush.bf16.msra.mxu3 %v1847_v2  ;;  %1922 = vmatpush.bf16.msra.mxu1 %v1847_v2  ;;  %v1842_v5 = vld [vmem:[%s2312_s20 + $0x18] sm:$0xff]  ;;  %v1845_v6 = vld [vmem:[%s2312_s20 + $0x30] sm:$0xff]  ;;  %v2320_v7 = vld [vmem:[%s2307_s19] sm:$0xf]  ;;  %s372_s30 = sadd.s32 %s1616_s17, %s2860_s27  ;;  %s2160_s16 = smov 64  }
  0x21   : > { %v2323_v8 = vld [vmem:[%s2307_s19 + $0x4] sm:$0xf]  ;;  %v2326_v9 = vld [vmem:[%s2307_s19 + $0x8] sm:$0xf]  ;;  %415 = vst.msk [vmem:[#allocation2 + $0x8] sm:$0xf] %vm414_vm1, %v2320_v7 }
  0x22   : > { %1716 = vmatmul.msk.bf16.vlgmr.msra.gmra.mxu2 %vm687_vm0, %v1842_v5  ;;  %s1617_s15 = sshll.u32 %s372_s30, 1  ;;  %416 = vst.msk [vmem:[#allocation2 + $0xc] sm:$0xf] %vm414_vm1, %v2323_v8  ;;  %v2344_v13 = vld [vmem:[%s2307_s19 + $0xc] sm:$0xf]  ;;  %v1843_v20 = vld [vmem:[%s2312_s20 + $0x20] sm:$0xff] }
  0x23   : > { %592 = vmatpush.bf16.msra.mxu0 %v1857_v4  ;;  %1719 = vmatmul.msk.bf16.vlgmr.msra.gmra.mxu3 %vm687_vm0, %v1845_v6  ;;  %s374_s13 = scalar_lea.vmem %s2822_s1, %s1617_s15  ;;  %417 = vst.msk [vmem:[#allocation2 + $0x10] sm:$0xf] %vm414_vm1, %v2326_v9  ;;  %v2352_v14 = vld [vmem:[%s2307_s19 + $0x10] sm:$0xf]  ;;  %v1846_v22 = vld [vmem:[%s2312_s20 + $0x38] sm:$0xff]  ;;  %v1844_v37 = vld [vmem:[%s2312_s20 + $0x28] sm:$0xff] }
  0x24   : > { %847 = vmatpush.bf16.msrb.mxu2 %v1863_v11  ;;  %v406_v15 = vld [vmem:[%s374_s13] sm:$0x3]  ;;  %1008 = vmatpush.bf16.msrb.mxu3 %v1867_v12  ;;  %418 = vst.msk [vmem:[#allocation2 + $0x14] sm:$0xf] %vm414_vm1, %v2344_v13  ;;  %v2376_v24 = vld [vmem:[%s2307_s19 + $0x14] sm:$0xf] }
  0x25   : > { %409 = vst [vmem:[#allocation1 + $0x1] ss:$2 sm:$0xff] %v406_v15  ;;  %v2379_v25 = vld [vmem:[%s2307_s19 + $0x18] sm:$0xf]  ;;  %v1841_v35 = vld [vmem:[%s2312_s20 + $0x10] sm:$0xff]  ;;  %v1831_v38 = vld [vmem:[%s2307_s19] sm:$0xff] }
  0x26   : > { %419 = vst.msk [vmem:[#allocation2 + $0x18] sm:$0xf] %vm414_vm1, %v2352_v14  ;;  %1715 = vmatmul.msk.bf16.vlgmr.msra.gmra.mxu1 %vm687_vm0, %v1841_v35  ;;  %v2397_v40 = vld [vmem:[%s2307_s19 + $0x1c] sm:$0xf]  ;;  %v2400_v41 = vld [vmem:[%s2307_s19 + $0x20] sm:$0xf] }
  0x27   : > { %593 = vmatpush.bf16.msra.mxu0 %v1856_v10  ;;  %420 = vst.msk [vmem:[#allocation2 + $0x1c] sm:$0xf] %vm414_vm1, %v2376_v24  ;;  %v1832_v50 = vld [vmem:[%s2307_s19 + $0x8] sm:$0xff]  ;;  %v2413_v51 = vld [vmem:[%s2307_s19 + $0x24] sm:$0xf]  ;;  %v1833_v58 = vld [vmem:[%s2307_s19 + $0x10] sm:$0xff] }
  0x28   : > { %848 = vmatpush.bf16.msrb.mxu2 %v1862_v16  ;;  %1009 = vmatpush.bf16.msrb.mxu3 %v1866_v17  ;;  %v452_v26 = vld [vmem:[#allocation2 + $0x8] sm:$0xf]  ;;  %421 = vst.msk [vmem:[#allocation2 + $0x20] sm:$0xf] %vm414_vm1, %v2379_v25  ;;  %v2416_v52 = vld [vmem:[%s2307_s19 + $0x28] sm:$0xf] }
  0x29   : > { %v494_v29 = vunpack.c.l.b16 %v452_v26  ;;  %422 = vst.msk [vmem:[#allocation2 + $0x24] sm:$0xf] %vm414_vm1, %v2397_v40  ;;  %v2429_v59 = vld [vmem:[%s2307_s19 + $0x2c] sm:$0xf]  ;;  %v2432_v60 = vld [vmem:[%s2307_s19 + $0x30] sm:$0xf] }
  0x2a   : > { %v1849_v28 = vld [vmem:[#allocation2 + $0xc] sm:$0xff]  ;;  %423 = vst.msk [vmem:[#allocation2 + $0x28] sm:$0xf] %vm414_vm1, %v2400_v41  ;;  %v2459_v12 = vld [vmem:[%s2307_s19 + $0x3c] sm:$0xf]  ;;  %v1835_v16 = vld [vmem:[%s2307_s19 + $0x20] sm:$0xff] }
  0x2b   : > { %718 = vmatpush.bf16.msrb.mxu0 %v1848_v0  ;;  %v521_v33 = vrot.slane %v1849_v28, 2  ;;  %v779_v48 = vrot.slane %v1849_v28, 3  ;;  %424 = vst.msk [vmem:[#allocation2 + $0x2c] sm:$0xf] %vm414_vm1, %v2413_v51  ;;  %v2445_v3 = vld [vmem:[%s2307_s19 + $0x34] sm:$0xf] }
  0x2c   : > { %v410_v18 = vld.sshfl [vmem:[#allocation1] sm:$0xff pattern:$0x75643120]  ;;  %849 = vmatpush.bf16.msrb.mxu2 %v1861_v19  ;;  %1010 = vmatpush.bf16.msrb.mxu3 %v1865_v21  ;;  %425 = vst.msk [vmem:[#allocation2 + $0x30] sm:$0xf] %vm414_vm1, %v2416_v52  ;;  %s354_s21 = sand.u32 1, %s2134_s25  }
  0x2d   : > { %413 = vst.msk [vmem:[#allocation2 + $0x4] sm:$0xc] %vm412_vm2, %v410_v18  ;;  %v1850_v42 = vld [vmem:[#allocation2 + $0x14] sm:$0xff]  ;;  %v2448_v4 = vld [vmem:[%s2307_s19 + $0x38] sm:$0xf]  ;;  %s1612_s23 = sshll.u32 %s354_s21, 6 }
  0x2e   : > { %v523_v44 = vrot.slane %v1850_v42, 2  ;;  %v781_v56 = vrot.slane %v1850_v42, 3  ;;  %426 = vst.msk [vmem:[#allocation2 + $0x34] sm:$0xf] %vm414_vm1, %v2429_v59  ;;  %s2721_s27 = scalar_lea.vmem [#allocation3], %s1612_s23  ;;  %s1463_s18 = scalar_lea.sflag [#allocation4], %s354_s21 }
  0x2f   : > { %719 = vmatpush.bf16.msrb.mxu0 %v1847_v2  ;;  %v1851_v53 = vld [vmem:[#allocation2 + $0x1c] sm:$0xff]  ;;  %427 = vst.msk [vmem:[#allocation2 + $0x38] sm:$0xf] %vm414_vm1, %v2432_v60  ;;  %v1834_v2 = vld [vmem:[%s2307_s19 + $0x18] sm:$0xff]  ;;  %s1477_s28 = sshll.u32 %s2721_s27, 4  ;;  %s2084_s12 = scalar_lea.hbm %s2828_s7, 512  ;;  %s1478_s28 = int_to_ptr.vmem [resolvable:$true] %s1477_s28 }
  0x30   : > { %850 = vmatpush.bf16.msrb.mxu2 %v1860_v23  ;;  %1011 = vmatpush.bf16.msrb.mxu3 %v1864_v27  ;;  %v524_v46 = vsel %vm519_vm3, %v521_v33, %v523_v44  ;;  %v525_v54 = vrot.slane %v1851_v53, 2  ;;  %v782_v57 = vsel %vm777_vm5, %v779_v48, %v781_v56  ;;  %v783_v0 = vrot.slane %v1851_v53, 3  ;;  %428 = vst.msk [vmem:[#allocation2 + $0x3c] sm:$0xf] %vm414_vm1, %v2445_v3 }
  0x31   : > { %v1852_v61 = vld [vmem:[#allocation2 + $0x24] sm:$0xff]  ;;  %429 = vst.msk [vmem:[#allocation2 + $0x40] sm:$0xf] %vm414_vm1, %v2448_v4 }
  0x32   : > { %1717 = vmatmul.msk.bf16.gmra.mxu2 %vm687_vm0, %v1843_v20  ;;  %v526_v55 = vsel %vm519_vm3, %v523_v44, %v525_v54  ;;  %v527_v62 = vrot.slane %v1852_v61, 2  ;;  %v784_v1 = vsel %vm777_vm5, %v781_v56, %v783_v0  ;;  %v785_v11 = vrot.slane %v1852_v61, 3  ;;  %430 = vst.msk [vmem:[#allocation2 + $0x44] sm:$0xf] %vm414_vm1, %v2459_v12  ;;  %v1838_v44 = vld [vmem:[%s2307_s19 + $0x38] sm:$0xff] }
  0x33   : > { %1720 = vmatmul.msk.bf16.gmra.mxu3 %vm687_vm0, %v1846_v22  ;;  %v1853_v5 = vld [vmem:[#allocation2 + $0x2c] sm:$0xff]  ;;  %v1836_v22 = vld [vmem:[%s2307_s19 + $0x28] sm:$0xff] }
  0x34   : > { %v451_v30 = vld [vmem:[#allocation2 + $0x4] sm:$0xc]  ;;  %v528_v63 = vsel %vm519_vm3, %v525_v54, %v527_v62  ;;  %v529_v6 = vrot.slane %v1853_v5, 2  ;;  %v786_v15 = vsel %vm777_vm5, %v783_v0, %v785_v11  ;;  %v787_v20 = vrot.slane %v1853_v5, 3 }
  0x35   : > { %v493_v31 = vunpack.c.l.b16 %v451_v30  ;;  %v761_v39 = vld [vmem:[#allocation2 + $0x4] sm:$0x8] }
  0x36   : > { %v773_v43 = vunpack.c.l.b16 %v761_v39  ;;  %v530_v10 = vsel %vm519_vm3, %v527_v62, %v529_v6  ;;  %v1854_v17 = vld [vmem:[#allocation2 + $0x34] sm:$0xff]  ;;  %v788_v21 = vsel %vm777_vm5, %v785_v11, %v787_v20 }
  0x37   : > { %v510_v32 = vpack.c.b16 %v494_v29, %v493_v31  ;;  %v531_v18 = vrot.slane %v1854_v17, 2  ;;  %v789_v28 = vrot.slane %v1854_v17, 3 }
  0x38   : > { %v775_v45 = vpack.c.b16 %v494_v29, %v773_v43  ;;  %v1855_v23 = vld [vmem:[#allocation2 + $0x3c] sm:$0xff] }
  0x39   : > { %v520_v34 = vrot.slane %v510_v32, 2  ;;  %v532_v19 = vsel %vm519_vm3, %v529_v6, %v531_v18  ;;  %v533_v26 = vrot.slane %v1855_v23, 2  ;;  %v467_v29 = vld [vmem:[#allocation2 + $0x44] sm:$0x3]  ;;  %v790_v31 = vsel %vm777_vm5, %v787_v20, %v789_v28  ;;  %v1837_v32 = vld [vmem:[%s2307_s19 + $0x30] sm:$0xff]  ;;  %s1474_s19 = sadd.s32 %s1827_s9, %s2277_s22 }
  0x3a   : > { %v778_v47 = vrot.slane %v775_v45, 3  ;;  %v509_v30 = vunpack.c.l.b16 %v467_v29  ;;  %v762_v45 = vld [vmem:[#allocation2 + $0x44] sm:$0x7] }
  0x3b   : > { %v522_v36 = vsel %vm519_vm3, %v520_v34, %v521_v33  ;;  %v534_v27 = vsel %vm519_vm3, %v531_v18, %v533_v26 }
  0x3c   : > { %1665 = vmatmul.msk.bf16.vlgmr.msra.gmra.mxu0 %vm561_vm4, %v522_v36  ;;  %v780_v49 = vsel %vm777_vm5, %v778_v47, %v779_v48  ;;  %v518_v33 = vpack.c.b16 %v509_v30, %v509_v30 }
  0x3e   : > { %v535_v35 = vrot.slane %v518_v33, 2 }
  0x42   : > { %1718 = vmatmul.msk.bf16.gmra.mxu2 %vm687_vm0, %v1844_v37  ;;  %v536_v37 = vsel %vm519_vm3, %v533_v26, %v535_v35 }
  0x43   : > { %1793 = vmatmul.msk.bf16.vlgmr.msrb.gmra.mxu3 %vm561_vm4, %v1831_v38  ;;  %v791_v38 = vrot.slane %v1855_v23, 3 }
  0x45   : > { %v792_v43 = vsel %vm777_vm5, %v789_v28, %v791_v38 }
  0x4c   : > { %1666 = vmatmul.msk.bf16.gmra.mxu0 %vm561_vm4, %v524_v46  ;;  %v774_v46 = vunpack.c.l.b16 %v762_v45 }
  0x52   : > { %1737 = vmatmul.msk.bf16.vlgmr.msrb.gmra.mxu2 %vm561_vm4, %v780_v49  ;;  %v776_v49 = vpack.c.b16 %v774_v46, %v774_v46 }
  0x53   : > { %1794 = vmatmul.msk.bf16.gmra.mxu3 %vm561_vm4, %v1832_v50  ;;  %v1839_v50 = vld [vmem:[%s2312_s20] sm:$0xff] }
  0x54   : > { %v793_v54 = vrot.slane %v776_v49, 3 }
  0x5c   : > { %1667 = vmatmul.msk.bf16.gmra.mxu0 %vm561_vm4, %v526_v55 }
  0x62   : > { %1738 = vmatmul.msk.bf16.gmra.mxu2 %vm561_vm4, %v782_v57  ;;  %v794_v57 = vsel %vm777_vm5, %v791_v38, %v793_v54 }
  0x63   : > { %1795 = vmatmul.msk.bf16.gmra.mxu3 %vm561_vm4, %v1833_v58 }
  0x6c   : > { %1668 = vmatmul.msk.bf16.gmra.mxu0 %vm561_vm4, %v528_v63  ;;  %v1840_v63 = vld [vmem:[%s2312_s20 + $0x8] sm:$0xff]  ;;  %s1828_s20 = sshll.u32 %s1474_s19, 2 }
  0x6d   : > { %s1476_s17 = scalar_lea.hbm %s2828_s7, %s1828_s20 }
  0x6e   : > { %s1479_s22 = sshll.u32 %s1476_s17, 4  ;;  %s1480_s22 = int_to_ptr.hbm [resolvable:$true] %s1479_s22 }
  0x6f   : > { %s2078_s26 = sshra.s32 %s1480_s22, 4  ;;  %s2079_s26 = int_to_ptr.hbm [resolvable:$true] %s2078_s26 }
  0x70   : > { %s2080_s29 = scalar_lea.hbm %s2079_s26, 64  ;;  %p2085_p5 = scmp.lt.s32.totalorder %s2079_s26, %s2828_s7 }
  0x71   : > { %p2081_p1 = scmp.ne.s32.totalorder %s2079_s26, %s2080_s29  ;;  %p2086_p6 = scmp.lt.s32.totalorder %s2084_s12, %s2080_s29 }
  0x72   : > { %1739 = vmatmul.msk.bf16.gmra.mxu2 %vm561_vm4, %v784_v1 }
  0x73   : > { %1796 = vmatmul.msk.bf16.gmra.mxu3 %vm561_vm4, %v1834_v2  ;;  %p2082_p2 = pnand %p2081_p1, %p2253_p3  ;;  %p2087_p7 = por %p2086_p6, %p2085_p5 }
  0x75   : > { %p2083_p4 = pneg %p2082_p2 }
  0x77   : > { %p2088_p9 = pnand %p2087_p7, %p2083_p4 }
  0x7c   : > { %1669 = vmatmul.msk.bf16.gmra.mxu0 %vm561_vm4, %v530_v10 }
  0x82   : > { %1740 = vmatmul.msk.bf16.gmra.mxu2 %vm561_vm4, %v786_v15 }
  0x83   : > { %1797 = vmatmul.msk.bf16.gmra.mxu3 %vm561_vm4, %v1835_v16 }
  0x8c   : > { %1670 = vmatmul.msk.bf16.gmra.mxu0 %vm561_vm4, %v532_v19 }
  0x92   : > { %1741 = vmatmul.msk.bf16.gmra.mxu2 %vm561_vm4, %v788_v21 }
  0x93   : > { %1798 = vmatmul.msk.bf16.gmra.mxu3 %vm561_vm4, %v1836_v22 }
  0x9c   : > { %1671 = vmatmul.msk.bf16.gmra.mxu0 %vm561_vm4, %v534_v27 }
  0xa2   : > { %1742 = vmatmul.msk.bf16.gmra.mxu2 %vm561_vm4, %v790_v31  ;;  %v2532_v31 = vld [vmem:[%s387_s10] ss:$0 sm:$0xff] }
  0xa3   : > { %1799 = vmatmul.msk.bf16.gmra.mxu3 %vm561_vm4, %v1837_v32  ;;  %v731_v26 = vpop.f32.mrf.mxu1 }
  0xa5   : > { %v736_v34 = vpop.f32.mrf.mxu2 }
  0xa6   : > { %v2479_v36 = vpop.f32.mrf.mxu3 }
  0xac   : > { %1672 = vmatmul.msk.bf16.gmra.mxu0 %vm561_vm4, %v536_v37  ;;  %v733_v37 = vpop.f32.mrf.mxu1 }
  0xad   : > { %v738_v39 = vpop.f32.mrf.mxu2 }
  0xae   : > { %v2483_v42 = vpop.f32.mrf.mxu3 }
  0xb2   : > { %1743 = vmatmul.msk.bf16.gmra.mxu2 %vm561_vm4, %v792_v43 }
  0xb3   : > { %1800 = vmatmul.msk.bf16.gmra.mxu3 %vm561_vm4, %v1838_v44 }
  0xb5   : > { %v2489_v47 = vpop.f32.mrf.mxu2 }
  0xb6   : > { %v2491_v48 = vpop.f32.mrf.mxu3 }
  0xb9   : > { %v2494_v53 = vpop.f32.mrf.mxu0 }
  0xbc   : > { %1713 = vmatmul.msk.bf16.vlgmr.msrb.gmra.mxu0 %vm687_vm0, %v1839_v50 }
  0xbd   : > { %v743_v55 = vpop.f32.mrf.mxu2 }
  0xbe   : > { %v2497_v56 = vpop.f32.mrf.mxu3 }
  0xc1   : > { %v2500_v58 = vpop.f32.mrf.mxu0 }
  0xc2   : > { %1744 = vmatmul.msk.bf16.gmra.mxu2 %vm561_vm4, %v794_v57 }
  0xc5   : > { %v746_v61 = vpop.f32.mrf.mxu2 }
  0xc6   : > { %v2503_v62 = vpop.f32.mrf.mxu3 }
  0xc9   : > { %v2506_v0 = vpop.f32.mrf.mxu0 }
  0xcc   : > { %1714 = vmatmul.msk.bf16.gmra.mxu0 %vm687_vm0, %v1840_v63 }
  0xcd   : > { %v2509_v1 = vpop.f32.mrf.mxu2 }
  0xce   : > { %v2511_v2 = vpop.f32.mrf.mxu3 }
  0xd1   : > { %v2513_v5 = vpop.f32.mrf.mxu0 }
  0xd5   : > { %v2515_v6 = vpop.f32.mrf.mxu2 }
  0xd6   : > { %v2517_v10 = vpop.f32.mrf.mxu3 }
  0xd9   : > { %v605_v11 = vpop.f32.mrf.mxu0 }
  0xda   : > { %v732_v29 = vadd.f32 %v731_v26, %v605_v11 }
  0xdd   : > { %v2519_v15 = vpop.f32.mrf.mxu2 }
  0xde   : > { %v2521_v16 = vpop.f32.mrf.mxu3 }
  0xe1   : > { %v607_v17 = vpop.f32.mrf.mxu0 }
  0xe2   : > { %v734_v43 = vadd.f32 %v733_v37, %v607_v17 }
  0xe5   : > { %v2523_v18 = vpop.f32.mrf.mxu2 }
  0xe6   : > { %v1023_v19 = vpop.f32.mrf.mxu3 }
  0xe9   : > { %v610_v20 = vpop.f32.mrf.mxu0 }
  0xea   : > { %v737_v21 = vadd.f32 %v736_v34, %v610_v20 }
  0xed   : > { %v2525_v22 = vpop.f32.mrf.mxu2 }
  0xee   : > { %v1025_v23 = vpop.f32.mrf.mxu3 }
  0xf1   : > { %v612_v27 = vpop.f32.mrf.mxu0 }
  0xf2   : > { %v739_v28 = vadd.f32 %v738_v39, %v612_v27 }
  0xf5   : > { %v862_v30 = vpop.f32.mrf.mxu2 }
  0xf6   : > { %v896_v32 = vadd.f32 %v862_v30, %v732_v29  ;;  %v1028_v33 = vpop.f32.mrf.mxu3 }
  0xf8   : > { %v1057_v35 = vadd.f32 %v1023_v19, %v896_v32 }
  0xf9   : > { %v615_v38 = vpop.f32.mrf.mxu0 }
  0xfa   : > { %v2535_v34 = vadd.f32 %v2532_v31, %v1057_v35 }
  0xfc   : > { %v1109_v44 = vmul.f32 0.5, %v2535_v34 }
  0xfd   : > { %v864_v39 = vpop.f32.mrf.mxu2 }
  0xfe   : > { %v897_v45 = vadd.f32 %v864_v39, %v734_v43  ;;  %2000 = vtanh.f32 %v1109_v44  ;;  %v1030_v46 = vpop.f32.mrf.mxu3 }
 0x100   : > { %v1058_v49 = vadd.f32 %v1025_v23, %v897_v45 }
 0x101   : > { %v617_v50 = vpop.f32.mrf.mxu0 }
 0x102   : > { %v2539_v54 = vadd.f32 %v2532_v31, %v1058_v49  ;;  %v2541_v57 = vadd.f32 %v743_v55, %v617_v50 }
 0x104   : > { %v2001_v63 = vpop.eup %2000  ;;  %v1110_v11 = vmul.f32 0.5, %v2539_v54 }
 0x105   : > { %v867_v19 = vpop.f32.mrf.mxu2  ;;  %v1141_v20 = vmul.f32 0.5, %v2001_v63 }
 0x106   : > { %2002 = vtanh.f32 %v1110_v11  ;;  %v898_v17 = vadd.f32 %v867_v19, %v737_v21  ;;  %v1033_v23 = vpop.f32.mrf.mxu3 }
 0x107   : > { %v1157_v26 = vadd.f32 0.5, %v1141_v20 }
 0x108   : > { %v2544_v27 = vadd.f32 %v1028_v33, %v898_v17  ;;  %v742_v33 = vadd.f32 %v2489_v47, %v615_v38 }
 0x109   : > { %1193 = vrot.lane.b32.xlu2 %v1157_v26, %s2160_s16  ;;  %v620_v29 = vpop.f32.mrf.mxu0 }
 0x10a   : > { %v2547_v30 = vadd.f32 %v746_v61, %v620_v29 }
 0x10c   : > { %v2003_v32 = vpop.eup %2002 }
 0x10d   : > { %v869_v55 = vpop.f32.mrf.mxu2  ;;  %v1142_v35 = vmul.f32 0.5, %v2003_v32 }
 0x10e   : > { %v899_v37 = vadd.f32 %v869_v55, %v739_v28  ;;  %v1035_v39 = vpop.f32.mrf.mxu3 }
 0x10f   : > { %v1158_v43 = vadd.f32 0.5, %v1142_v35 }
 0x110   : > { %v2549_v44 = vadd.f32 %v1030_v46, %v899_v37 }
 0x111   : > { %1195 = vrot.lane.b32.xlu2 %v1158_v43, %s2160_s16  ;;  %v622_v21 = vpop.f32.mrf.mxu0 }
 0x112   : > { %v749_v29 = vadd.f32 %v2509_v1, %v622_v21 }
 0x115   : > { %v872_v45 = vpop.f32.mrf.mxu2 }
 0x116   : > { %v900_v49 = vadd.f32 %v872_v45, %v742_v33  ;;  %v2557_v28 = vpop.f32.mrf.mxu3 }
 0x118   : > { %v1061_v50 = vadd.f32 %v1033_v23, %v900_v49 }
 0x119   : > { %v625_v63 = vpop.f32.mrf.mxu0 }
 0x11a   : > { %v2554_v61 = vadd.f32 %v2532_v31, %v1061_v50 }
 0x11c   : > { %v1113_v11 = vmul.f32 0.5, %v2554_v61 }
 0x11d   : > { %v874_v19 = vpop.f32.mrf.mxu2 }
 0x11e   : > { %2004 = vtanh.f32 %v1113_v11  ;;  %v1040_v38 = vpop.f32.mrf.mxu3 }
 0x121   : > { %v2559_v46 = vpop.f32.mrf.mxu0 }
 0x124   : > { %v2005_v20 = vpop.eup %2004 }
 0x125   : > { %v2561_v17 = vpop.f32.mrf.mxu2  ;;  %v1145_v26 = vmul.f32 0.5, %v2005_v20 }
 0x126   : > { %v1043_v37 = vpop.f32.mrf.mxu3 }
 0x127   : > { %v1161_v47 = vadd.f32 0.5, %v1145_v26 }
 0x129   : > { %1201 = vrot.lane.b32.xlu2 %v1161_v47, %s2160_s16  ;;  %v630_v23 = vpop.f32.mrf.mxu0 }
 0x12d   : > { %v879_v32 = vpop.f32.mrf.mxu2 }
 0x12e   : > { %v903_v55 = vadd.f32 %v879_v32, %v749_v29  ;;  %v2572_v20 = vpop.f32.mrf.mxu3 }
 0x130   : > { %v1064_v35 = vadd.f32 %v1040_v38, %v903_v55 }
 0x131   : > { %v2565_v43 = vpop.f32.mrf.mxu0 }
 0x132   : > { %v2568_v33 = vadd.f32 %v2532_v31, %v1064_v35 }
 0x134   : > { %v1116_v45 = vmul.f32 0.5, %v2568_v33 }
 0x135   : > { %v882_v49 = vpop.f32.mrf.mxu2 }
 0x136   : > { %2006 = vtanh.f32 %v1116_v45  ;;  %v757_v45 = vadd.f32 %v2491_v48, %v630_v23 }
 0x139   : > { %v721_v50 = vpop.f32.mrf.mxu0 }
 0x13a   : > { %v722_v11 = vadd.f32 %v721_v50, %v2494_v53 }
 0x13c   : > { %v2007_v26 = vpop.eup %2006  ;;  %v892_v1 = vadd.f32 %v2515_v6, %v722_v11  ;;  %v1048_v11 = vpop.f32.mrf.mxu3 }
 0x13d   : > { %v2575_v21 = vpop.f32.mrf.mxu2  ;;  %v1148_v47 = vmul.f32 0.5, %v2007_v26 }
 0x13e   : > { %v1053_v38 = vadd.f32 %v2503_v62, %v892_v1  ;;  %v901_v1 = vadd.f32 %v874_v19, %v2541_v57 }
 0x13f   : > { %v1164_v29 = vadd.f32 0.5, %v1148_v47 }
 0x140   : > { %v2580_v32 = vadd.f32 %v2532_v31, %v1053_v38  ;;  %v2590_v38 = vadd.f32 %v2532_v31, %v2544_v27 }
 0x141   : > { %1207 = vrot.lane.b32.xlu2 %v1164_v29, %s2160_s16  ;;  %v723_v55 = vpop.f32.mrf.mxu0 }
 0x142   : > { %v724_v35 = vadd.f32 %v723_v55, %v2500_v58  ;;  %v1105_v53 = vmul.f32 0.5, %v2580_v32 }
 0x144   : > { %v893_v6 = vadd.f32 %v2519_v15, %v724_v35  ;;  %2008 = vtanh.f32 %v1105_v53  ;;  %v1111_v35 = vmul.f32 0.5, %v2590_v38 }
 0x145   : > { %v887_v50 = vpop.f32.mrf.mxu2 }
 0x146   : > { %v906_v26 = vadd.f32 %v887_v50, %v757_v45  ;;  %v1054_v62 = vadd.f32 %v2511_v2, %v893_v6  ;;  %v1062_v2 = vadd.f32 %v1035_v39, %v901_v1  ;;  %v752_v45 = vadd.f32 %v2479_v36, %v625_v63 }
 0x148   : > { %v1067_v47 = vadd.f32 %v1048_v11, %v906_v26  ;;  %v2593_v58 = vadd.f32 %v2532_v31, %v1054_v62  ;;  %v2606_v50 = vadd.f32 %v2532_v31, %v1062_v2 }
 0x149   : > { %v726_v29 = vpop.f32.mrf.mxu0 }
 0x14a   : > { %v2596_v48 = vadd.f32 %v2532_v31, %v1067_v47  ;;  %v2009_v15 = vpop.eup %2008  ;;  %v727_v23 = vadd.f32 %v726_v29, %v2506_v0  ;;  %v1106_v55 = vmul.f32 0.5, %v2593_v58  ;;  %v904_v0 = vadd.f32 %v882_v49, %v752_v45 }
 0x14b   : > { %v1137_v19 = vmul.f32 0.5, %v2009_v15  ;;  %v1114_v36 = vmul.f32 0.5, %v2606_v50 }
 0x14c   : > { %v1119_v57 = vmul.f32 0.5, %v2596_v48  ;;  %v894_v27 = vadd.f32 %v2523_v18, %v727_v23  ;;  %2010 = vtanh.f32 %v1106_v55  ;;  %v1065_v63 = vadd.f32 %v1043_v37, %v904_v0 }
 0x14d   : > { %v1153_v53 = vadd.f32 0.5, %v1137_v19  ;;  %v889_v15 = vpop.f32.mrf.mxu2  ;;  %v759_v55 = vadd.f32 %v2497_v56, %v2565_v43  ;;  %v902_v37 = vadd.f32 %v2561_v17, %v2547_v30 }
 0x14e   : > { %2012 = vtanh.f32 %v1119_v57  ;;  %v1055_v6 = vadd.f32 %v2517_v10, %v894_v27  ;;  %v2621_v57 = vadd.f32 %v2532_v31, %v2549_v44 }
 0x14f   : > { %1185 = vrot.lane.b32.xlu0 %v1153_v53, %s2160_s16  ;;  %2014 = vtanh.f32 %v1111_v35  ;;  %v907_v56 = vadd.f32 %v889_v15, %v759_v55  ;;  %v1063_v30 = vadd.f32 %v2557_v28, %v902_v37 }
 0x150   : > { %v2610_v39 = vadd.f32 %v2532_v31, %v1055_v6  ;;  %v1112_v27 = vmul.f32 0.5, %v2621_v57 }
 0x151   : > { %v728_v11 = vpop.f32.mrf.mxu0 }
 0x152   : > { %v2011_v26 = vpop.eup %2010  ;;  %v729_v18 = vadd.f32 %v728_v11, %v2513_v5  ;;  %v1107_v62 = vmul.f32 0.5, %v2610_v39 }
 0x153   : > { %v1138_v10 = vmul.f32 0.5, %v2011_v26  ;;  %v754_v26 = vadd.f32 %v2483_v42, %v2559_v46 }
 0x154   : > { %v2013_v1 = vpop.eup %2012  ;;  %v895_v47 = vadd.f32 %v2525_v22, %v729_v18  ;;  %2016 = vtanh.f32 %v1107_v62  ;;  %v2627_v22 = vadd.f32 %v2532_v31, %v1065_v63  ;;  %v2640_v18 = vadd.f32 %v2532_v31, %v1063_v30 }
 0x155   : > { %v1151_v29 = vmul.f32 0.5, %v2013_v1  ;;  %v1154_v49 = vadd.f32 0.5, %v1138_v10  ;;  %v2015_v23 = vpop.eup %2014  ;;  %2018 = vtanh.f32 %v1114_v36  ;;  %v905_v28 = vadd.f32 %v2575_v21, %v754_v26  ;;  %v1870_v26 = vld [vmem:[%s2826_s5 + $0x10] sm:$0xff] }
 0x156   : > { %v1056_v2 = vadd.f32 %v2521_v16, %v895_v47  ;;  %v1050_v16 = vpop.f32.mrf.mxu3  ;;  %v1143_v43 = vmul.f32 0.5, %v2015_v23  ;;  %v1117_v53 = vmul.f32 0.5, %v2627_v22  ;;  %v1115_v42 = vmul.f32 0.5, %v2640_v18 }
 0x157   : > { %v1167_v5 = vadd.f32 0.5, %v1151_v29  ;;  %1187 = vrot.lane.b32.xlu0 %v1154_v49, %s2160_s16  ;;  %v1068_v45 = vadd.f32 %v1050_v16, %v907_v56  ;;  %v1066_v63 = vadd.f32 %v2572_v20, %v905_v28  ;;  %v1869_v28 = vld [vmem:[%s2826_s5 + $0x8] sm:$0xff] }
 0x158   : > { %v2630_v19 = vadd.f32 %v2532_v31, %v1056_v2  ;;  %v1159_v0 = vadd.f32 0.5, %v1143_v43 }
 0x159   : > { %1213 = vrot.lane.b32.xlu2 %v1167_v5, %s2160_s16  ;;  %v2646_v62 = vadd.f32 %v2532_v31, %v1068_v45 }
 0x15a   : > { %v2017_v35 = vpop.eup %2016  ;;  %v1108_v44 = vmul.f32 0.5, %v2630_v19 }
 0x15b   : > { %v1139_v17 = vmul.f32 0.5, %v2017_v35  ;;  %v2019_v11 = vpop.eup %2018  ;;  %v1120_v47 = vmul.f32 0.5, %v2646_v62 }
 0x15c   : > { %2020 = vtanh.f32 %v1108_v44  ;;  %v1146_v1 = vmul.f32 0.5, %v2019_v11  ;;  %v1871_v11 = vld [vmem:[%s2826_s5 + $0x18] sm:$0xff] }
 0x15d   : > { %v1155_v6 = vadd.f32 0.5, %v1139_v17  ;;  %2022 = vtanh.f32 %v1112_v27  ;;  %1321 = vmatpush.bf16.msrb.mxu1 %v1871_v11 }
 0x15e   : > { %2024 = vtanh.f32 %v1117_v53  ;;  %v1162_v21 = vadd.f32 0.5, %v1146_v1  ;;  %v1868_v1 = vld [vmem:[%s2826_s5] sm:$0xff] }
 0x15f   : > { %1189 = vrot.lane.b32.xlu1 %v1155_v6, %s2160_s16  ;;  %1197 = vrot.lane.b32.xlu0 %v1159_v0, %s2160_s16  ;;  %2026 = vtanh.f32 %v2535_v34  ;;  %v2656_v34 = vadd.f32 %v2532_v31, %v1066_v63 }
 0x160   : > { %2028 = vtanh.f32 %v2539_v54 }
 0x161   : > { %2030 = vtanh.f32 %v1115_v42  ;;  %v1118_v56 = vmul.f32 0.5, %v2656_v34  ;;  %1322 = vmatpush.bf16.msrb.mxu1 %v1870_v26 }
 0x162   : > { %v2021_v36 = vpop.eup %2020  ;;  %2032 = vtanh.f32 %v1120_v47 }
 0x163   : > { %v1194_v10 = vpop.permute.xlu2 %1193  ;;  %v1140_v46 = vmul.f32 0.5, %v2021_v36  ;;  %v2023_v29 = vpop.eup %2022  ;;  %2034 = vtanh.f32 %v1118_v56 }
 0x164   : > { %v2025_v49 = vpop.eup %2024  ;;  %v1144_v55 = vmul.f32 0.5, %v2023_v29  ;;  %2036 = vtanh.f32 %v2580_v32 }
 0x165   : > { %v1156_v15 = vadd.f32 0.5, %v1140_v46  ;;  %v2027_v23 = vpop.eup %2026  ;;  %v1149_v54 = vmul.f32 0.5, %v2025_v49  ;;  %1323 = vmatpush.bf16.msrb.mxu1 %v1869_v28  ;;  %2038 = vtanh.f32 %v2593_v58 }
 0x166   : > { %v2029_v2 = vpop.eup %2028  ;;  %v2658_v5 = vmul.f32 %v2027_v23, %v1194_v10  ;;  %v1160_v43 = vadd.f32 0.5, %v1144_v55  ;;  %2040 = vtanh.f32 %v2554_v61 }
 0x167   : > { %1191 = vrot.lane.b32.xlu1 %v1156_v15, %s2160_s16  ;;  %1203 = vrot.lane.b32.xlu0 %v1162_v21, %s2160_s16  ;;  %v2031_v16 = vpop.eup %2030  ;;  %v1165_v35 = vadd.f32 0.5, %v1149_v54  ;;  %2042 = vtanh.f32 %v2606_v50 }
 0x168   : > { %v2033_v31 = vpop.eup %2032  ;;  %v1147_v27 = vmul.f32 0.5, %v2031_v16  ;;  %2044 = vtanh.f32 %v2610_v39 }
 0x169   : > { %v1152_v30 = vmul.f32 0.5, %v2033_v31  ;;  %v2035_v45 = vpop.eup %2034  ;;  %1324 = vmatpush.bf16.msrb.mxu1 %v1868_v1  ;;  %2046 = vtanh.f32 %v2630_v19 }
 0x16a   : > { %v1163_v17 = vadd.f32 0.5, %v1147_v27  ;;  %v1150_v6 = vmul.f32 0.5, %v2035_v45  ;;  %v2037_v10 = vpop.eup %2036  ;;  %2048 = vtanh.f32 %v2590_v38 }
 0x16b   : > { %v1196_v20 = vpop.permute.xlu2 %1195  ;;  %v1168_v53 = vadd.f32 0.5, %v1152_v30  ;;  %v2039_v42 = vpop.eup %2038  ;;  %2050 = vtanh.f32 %v2621_v57 }
 0x16c   : > { %v2660_v37 = vmul.f32 %v2029_v2, %v1196_v20  ;;  %v1166_v0 = vadd.f32 0.5, %v1150_v6  ;;  %v2041_v32 = vpop.eup %2040  ;;  %2052 = vtanh.f32 %v2640_v18 }
 0x16d   : > { %v2043_v58 = vpop.eup %2042  ;;  %2054 = vtanh.f32 %v2568_v33 }
 0x16e   : > { %v1251_v44 = vpack.c.bf16 %v2660_v37, %v2658_v5  ;;  %v2045_v23 = vpop.eup %2044  ;;  %2056 = vtanh.f32 %v2596_v48  ;;  %v2710_v5 = vld [vmem:[%s2827_s6] ss:$0 sm:$0xff]  ;;  %v1366_v37 = vunpack.c.l.bf16 %v2320_v7 }
 0x16f   : > { %1199 = vrot.lane.b32.xlu1 %v1160_v43, %s2160_s16  ;;  %1209 = vrot.lane.b32.xlu0 %v1165_v35, %s2160_s16  ;;  %v2047_v55 = vpop.eup %2046  ;;  %2058 = vtanh.f32 %v2646_v62 }
 0x170   : > { %v2049_v39 = vpop.eup %2048  ;;  %2060 = vtanh.f32 %v2627_v22 }
 0x171   : > { %v2051_v35 = vpop.eup %2050  ;;  %2062 = vtanh.f32 %v2656_v34 }
 0x177   : > { %1205 = vrot.lane.b32.xlu1 %v1163_v17, %s2160_s16  ;;  %1215 = vrot.lane.b32.xlu0 %v1168_v53, %s2160_s16  ;;  %v2053_v17 = vpop.eup %2052 }
 0x178   : > { %v2055_v53 = vpop.eup %2054 }
 0x179   : > { %v2057_v6 = vpop.eup %2056 }
 0x17f   : > { %1211 = vrot.lane.b32.xlu1 %v1166_v0, %s2160_s16  ;;  %v2059_v0 = vpop.eup %2058 }
 0x180   : > { %v2061_v62 = vpop.eup %2060 }
 0x183   : > { %v1202_v49 = vpop.permute.xlu2 %1201 }
 0x184   : > { %v1241_v20 = vmul.f32 %v2041_v32, %v1202_v49 }
 0x19b   : > { %v1208_v19 = vpop.permute.xlu2 %1207 }
 0x19c   : > { %v1244_v26 = vmul.f32 %v2055_v53, %v1208_v19 }
 0x1b3   : > { %v1214_v45 = vpop.permute.xlu2 %1213 }
 0x1b4   : > { %v1247_v33 = vmul.f32 %v2057_v6, %v1214_v45 }
 0x1c1   : > { %v1186_v36 = vpop.permute.xlu0 %1185 }
 0x1c2   : > { %v1233_v63 = vmul.f32 %v2037_v10, %v1186_v36  ;;  %v2063_v10 = vpop.eup %2062 }
 0x1c9   : > { %v1188_v46 = vpop.permute.xlu0 %1187 }
 0x1ca   : > { %v1234_v47 = vmul.f32 %v2039_v42, %v1188_v46 }
 0x1cc   : > { %v1249_v29 = vpack.c.bf16 %v1234_v47, %v1233_v63 }
 0x1ce   : > { %1817 = vmatmul.msk.bf16.vlgmr.msrb.gmra.mxu1 %vm561_vm4, %v1249_v29  ;;  %v1382_v29 = vmul.f32 0.70710677, %v1366_v37 }
 0x1d1   : > { %v1190_v15 = vpop.permute.xlu1 %1189  ;;  %v1198_v21 = vpop.permute.xlu0 %1197 }
 0x1d2   : > { %v1235_v56 = vmul.f32 %v2045_v23, %v1190_v15  ;;  %v1239_v27 = vmul.f32 %v2049_v39, %v1198_v21 }
 0x1d9   : > { %v1192_v54 = vpop.permute.xlu1 %1191  ;;  %v1204_v2 = vpop.permute.xlu0 %1203 }
 0x1da   : > { %v1236_v61 = vmul.f32 %v2047_v55, %v1192_v54  ;;  %v1242_v16 = vmul.f32 %v2043_v58, %v1204_v2  ;;  %v1369_v2 = vunpack.c.l.bf16 %v2344_v13  ;;  %v1371_v13 = vunpack.c.l.bf16 %v2376_v24 }
 0x1db   : > { %v1373_v24 = vunpack.c.l.bf16 %v2397_v40  ;;  %v1375_v40 = vunpack.c.l.bf16 %v2413_v51  ;;  %v1377_v51 = vunpack.c.l.bf16 %v2429_v59  ;;  %v1378_v59 = vunpack.c.l.bf16 %v2432_v60 }
 0x1dc   : > { %v1250_v50 = vpack.c.bf16 %v1236_v61, %v1235_v56  ;;  %v1253_v43 = vpack.c.bf16 %v1242_v16, %v1241_v20  ;;  %v1385_v61 = vmul.f32 0.70710677, %v1369_v2 }
 0x1de   : > { %1818 = vmatmul.msk.bf16.gmra.mxu1 %vm561_vm4, %v1250_v50 }
 0x1e1   : > { %v1200_v38 = vpop.permute.xlu1 %1199  ;;  %v1210_v31 = vpop.permute.xlu0 %1209 }
 0x1e2   : > { %v1240_v30 = vmul.f32 %v2051_v35, %v1200_v38  ;;  %v1245_v22 = vmul.f32 %v2061_v62, %v1210_v31 }
 0x1e4   : > { %v1252_v57 = vpack.c.bf16 %v1240_v30, %v1239_v27 }
 0x1e9   : > { %v1206_v18 = vpop.permute.xlu1 %1205  ;;  %v1216_v11 = vpop.permute.xlu0 %1215 }
 0x1ea   : > { %v1243_v28 = vmul.f32 %v2053_v17, %v1206_v18  ;;  %v1248_v1 = vmul.f32 %v2059_v0, %v1216_v11 }
 0x1ec   : > { %v1254_v48 = vpack.c.bf16 %v1244_v26, %v1243_v28  ;;  %v1256_v36 = vpack.c.bf16 %v1248_v1, %v1247_v33  ;;  %v1389_v1 = vmul.f32 0.70710677, %v1373_v24 }
 0x1ee   : > { %1819 = vmatmul.msk.bf16.gmra.mxu1 %vm561_vm4, %v1251_v44  ;;  %v1367_v44 = vunpack.c.l.bf16 %v2323_v8  ;;  %v1368_v8 = vunpack.c.l.bf16 %v2326_v9  ;;  %v1370_v9 = vunpack.c.l.bf16 %v2352_v14  ;;  %v1372_v14 = vunpack.c.l.bf16 %v2379_v25 }
 0x1ef   : > { %v1374_v25 = vunpack.c.l.bf16 %v2400_v41  ;;  %v1376_v41 = vunpack.c.l.bf16 %v2416_v52 }
 0x1f0   : > { %v1383_v15 = vmul.f32 0.70710677, %v1367_v44  ;;  %v1384_v56 = vmul.f32 0.70710677, %v1368_v8  ;;  %v1386_v30 = vmul.f32 0.70710677, %v1370_v9 }
 0x1f1   : > { %v1212_v42 = vpop.permute.xlu1 %1211  ;;  %v1388_v28 = vmul.f32 0.70710677, %v1372_v14  ;;  %v1390_v37 = vmul.f32 0.70710677, %v1374_v25  ;;  %v1391_v44 = vmul.f32 0.70710677, %v1375_v40 }
 0x1f2   : > { %v1246_v46 = vmul.f32 %v2063_v10, %v1212_v42 }
 0x1f4   : > { %v1255_v63 = vpack.c.bf16 %v1246_v46, %v1245_v22 }
 0x1fe   : > { %1820 = vmatmul.msk.bf16.gmra.mxu1 %vm561_vm4, %v1252_v57  ;;  %v1387_v57 = vmul.f32 0.70710677, %v1371_v13 }
 0x20e   : > { %1821 = vmatmul.msk.bf16.gmra.mxu1 %vm561_vm4, %v1253_v43 }
 0x21e   : > { %1822 = vmatmul.msk.bf16.gmra.mxu1 %vm561_vm4, %v1254_v48 }
 0x22e   : > { %1823 = vmatmul.msk.bf16.gmra.mxu1 %vm561_vm4, %v1255_v63 }
 0x23e   : > { %1824 = vmatmul.msk.bf16.gmra.mxu1 %vm561_vm4, %v1256_v36 }
 0x24b   : > { %v1326_v34 = vpop.f32.mrf.mxu1 }
 0x24c   : > { %v1327_v47 = vadd.f32 %v2710_v5, %v1326_v34 }
 0x24e   : > { %v1398_v32 = vadd.f32 %v1382_v29, %v1327_v47 }
 0x250   : > { %v1414_v23 = vsel %vm561_vm4, %v1398_v32, %v1327_v47 }
 0x253   : > { %v1328_v21 = vpop.f32.mrf.mxu1 }
 0x254   : > { %v1329_v58 = vadd.f32 %v2710_v5, %v1328_v21 }
 0x256   : > { %v1399_v49 = vadd.f32 %v1383_v15, %v1329_v58 }
 0x258   : > { %v1415_v55 = vsel %vm561_vm4, %v1399_v49, %v1329_v58 }
 0x259   : > { %v1875_v54 = vpack.c.bf16 %v1415_v55, %v1414_v23 }
 0x25b   : > { %1876 = vst [vmem:[%s2721_s27] sm:$0xff] %v1875_v54   ;;  %v1331_v7 = vpop.f32.mrf.mxu1  ;;  %v1392_v54 = vmul.f32 0.70710677, %v1376_v41 }
 0x25c   : > { %v1332_v20 = vadd.f32 %v2710_v5, %v1331_v7  ;;  %v1393_v7 = vmul.f32 0.70710677, %v1377_v51 }
 0x25e   : > { %v1400_v50 = vadd.f32 %v1384_v56, %v1332_v20 }
 0x260   : > { %v1416_v19 = vsel %vm561_vm4, %v1400_v50, %v1332_v20 }
 0x263   : > { %v1333_v16 = vpop.f32.mrf.mxu1 }
 0x264   : > { %v1334_v43 = vadd.f32 %v2710_v5, %v1333_v16 }
 0x266   : > { %v1401_v39 = vadd.f32 %v1385_v61, %v1334_v43 }
 0x268   : > { %v1417_v35 = vsel %vm561_vm4, %v1401_v39, %v1334_v43  ;;  %v1379_v43 = vunpack.c.l.bf16 %v2445_v3  ;;  %v1380_v3 = vunpack.c.l.bf16 %v2448_v4 }
 0x269   : > { %v1880_v38 = vpack.c.bf16 %v1417_v35, %v1416_v19  ;;  %v1394_v19 = vmul.f32 0.70710677, %v1378_v59 }
 0x26a   : > { %v1395_v35 = vmul.f32 0.70710677, %v1379_v43 }
 0x26b   : > { %1912 = vst [vmem:[%s2721_s27 + $0x8] sm:$0xff] %v1880_v38   ;;  %v1336_v31 = vpop.f32.mrf.mxu1 }
 0x26c   : > { %v1337_v27 = vadd.f32 %v2710_v5, %v1336_v31 }
 0x26e   : > { %v1402_v53 = vadd.f32 %v1386_v30, %v1337_v27 }
 0x270   : > { %v1418_v0 = vsel %vm561_vm4, %v1402_v53, %v1337_v27 }
 0x273   : > { %v1338_v17 = vpop.f32.mrf.mxu1 }
 0x274   : > { %v1339_v45 = vadd.f32 %v2710_v5, %v1338_v17  ;;  %v1381_v17 = vunpack.c.l.bf16 %v2459_v12 }
 0x276   : > { %v1403_v6 = vadd.f32 %v1387_v57, %v1339_v45 }
 0x278   : > { %v1419_v18 = vsel %vm561_vm4, %v1403_v6, %v1339_v45  ;;  %v1396_v45 = vmul.f32 0.70710677, %v1380_v3  ;;  %v1397_v6 = vmul.f32 0.70710677, %v1381_v17 }
 0x279   : > { %v1885_v11 = vpack.c.bf16 %v1419_v18, %v1418_v0 }
 0x27b   : > { %1913 = vst [vmem:[%s2721_s27 + $0x10] sm:$0xff] %v1885_v11   ;;  %v1341_v26 = vpop.f32.mrf.mxu1 }
 0x27c   : > { %v1342_v33 = vadd.f32 %v2710_v5, %v1341_v26 }
 0x27e   : > { %v1404_v36 = vadd.f32 %v1388_v28, %v1342_v33 }
 0x280   : > { %v1420_v42 = vsel %vm561_vm4, %v1404_v36, %v1342_v33 }
 0x283   : > { %v1343_v48 = vpop.f32.mrf.mxu1 }
 0x284   : > { %v1344_v62 = vadd.f32 %v2710_v5, %v1343_v48 }
 0x286   : > { %v1405_v10 = vadd.f32 %v1389_v1, %v1344_v62 }
 0x288   : > { %v1421_v22 = vsel %vm561_vm4, %v1405_v10, %v1344_v62 }
 0x289   : > { %v1890_v46 = vpack.c.bf16 %v1421_v22, %v1420_v42 }
 0x28b   : > { %1914 = vst [vmem:[%s2721_s27 + $0x18] sm:$0xff] %v1890_v46   ;;  %v1346_v63 = vpop.f32.mrf.mxu1 }
 0x28c   : > { %v1347_v34 = vadd.f32 %v2710_v5, %v1346_v63 }
 0x28e   : > { %v1406_v29 = vadd.f32 %v1390_v37, %v1347_v34 }
 0x290   : > { %v1422_v32 = vsel %vm561_vm4, %v1406_v29, %v1347_v34 }
 0x293   : > { %v1348_v47 = vpop.f32.mrf.mxu1 }
 0x294   : > { %v1349_v15 = vadd.f32 %v2710_v5, %v1348_v47 }
 0x296   : > { %v1407_v21 = vadd.f32 %v1391_v44, %v1349_v15 }
 0x298   : > { %v1423_v58 = vsel %vm561_vm4, %v1407_v21, %v1349_v15 }
 0x299   : > { %v1895_v49 = vpack.c.bf16 %v1423_v58, %v1422_v32 }
 0x29b   : > { %1915 = vst [vmem:[%s2721_s27 + $0x20] sm:$0xff] %v1895_v49   ;;  %v1351_v23 = vpop.f32.mrf.mxu1 }
 0x29c   : > { %v1352_v55 = vadd.f32 %v2710_v5, %v1351_v23 }
 0x29e   : > { %v1408_v2 = vadd.f32 %v1392_v54, %v1352_v55 }
 0x2a0   : > { %v1424_v61 = vsel %vm561_vm4, %v1408_v2, %v1352_v55 }
 0x2a3   : > { %v1353_v8 = vpop.f32.mrf.mxu1 }
 0x2a4   : > { %v1354_v20 = vadd.f32 %v2710_v5, %v1353_v8 }
 0x2a6   : > { %v1409_v56 = vadd.f32 %v1393_v7, %v1354_v20 }
 0x2a8   : > { %v1425_v16 = vsel %vm561_vm4, %v1409_v56, %v1354_v20 }
 0x2a9   : > { %v1900_v50 = vpack.c.bf16 %v1425_v16, %v1424_v61 }
 0x2ab   : > { %1916 = vst [vmem:[%s2721_s27 + $0x28] sm:$0xff] %v1900_v50   ;;  %v1356_v52 = vpop.f32.mrf.mxu1 }
 0x2ac   : > { %v1357_v39 = vadd.f32 %v2710_v5, %v1356_v52 }
 0x2ae   : > { %v1410_v31 = vadd.f32 %v1394_v19, %v1357_v39 }
 0x2b0   : > { %v1426_v27 = vsel %vm561_vm4, %v1410_v31, %v1357_v39 }
 0x2b3   : > { %v1358_v38 = vpop.f32.mrf.mxu1 }
 0x2b4   : > { %v1359_v9 = vadd.f32 %v2710_v5, %v1358_v38 }
 0x2b6   : > { %v1411_v13 = vadd.f32 %v1395_v35, %v1359_v9 }
 0x2b8   : > { %v1427_v30 = vsel %vm561_vm4, %v1411_v13, %v1359_v9 }
 0x2b9   : > { %v1905_v57 = vpack.c.bf16 %v1427_v30, %v1426_v27 }
 0x2bb   : > { %1917 = vst [vmem:[%s2721_s27 + $0x30] sm:$0xff] %v1905_v57   ;;  %v1361_v60 = vpop.f32.mrf.mxu1 }
 0x2bc   : > { %v1362_v53 = vadd.f32 %v2710_v5, %v1361_v60 }
 0x2be   : > { %v1412_v18 = vadd.f32 %v1396_v45, %v1362_v53 }
 0x2c0   : > { %v1428_v12 = vsel %vm561_vm4, %v1412_v18, %v1362_v53 }
 0x2c3   : > { %v1363_v0 = vpop.f32.mrf.mxu1 }
 0x2c4   : > { %v1364_v11 = vadd.f32 %v2710_v5, %v1363_v0 }
 0x2c6   : > { %v1413_v4 = vadd.f32 %v1397_v6, %v1364_v11 }
 0x2c8   : > { %v1429_v26 = vsel %vm561_vm4, %v1413_v4, %v1364_v11 }
 0x2c9   : > { %v1910_v14 = vpack.c.bf16 %v1429_v26, %v1428_v12 }
 0x2cb   : > { %1918 = vst [vmem:[%s2721_s27 + $0x38] sm:$0xff] %v1910_v14  }
 0x2cc   : > { %2091 = shalt.err (!%p2088_p9)
}
 0x2cd   : > { %s2161_s21 = smov 4  }
 0x2ce   : > { %1925 = dma.vmem_to_hbm [thread:$0]  (%p2253_p3), %s1478_s28, 1024, %s1480_s22, %s1463_s18, %s2160_s16, %s2160_s16, %s2161_s21  }
 0x2cf PF: > { %p1931_p10 = scmp.ge.s32.totalorder %s2158_s8, 2  ;;  %s1494_s9 = sand.u32 1, %s2130_s24  }
 0x2d0   : > { %s1495_s19 = scalar_lea.sflag [#allocation4], %s1494_s9 }
 0x2d1   : > { %p1928_p11 = pnand %p1931_p10, %p2262_p8 }
 0x2d3   : > { %p1929_p12 = pneg %p1928_p11 }
 0x2d5   : > { %2125 = dma.done.wait (%p1929_p12), %s1495_s19, 1024  }
 0x2d6   : > { %2127 = vsyncadd (%p1929_p12), %s1495_s19, 4294966272  ;;  %s20_s8 = sadd.s32 1, %s2158_s8   ;;  %s2845_s14 = sld [smem:[#allocation6_spill]] }
 0x2d7   : > { %p17_p13 = scmp.ge.s32.totalorder %s20_s8, 10   ;;  %s2846_s26 = sld [smem:[#allocation12_spill]] }
 0x2d8   : > { %s2847_s27 = sld [smem:[#allocation7_spill]]  ;;  %s2851_s24 = smov %s2134_s25 }
 0x2d9   : > { %s2848_s28 = sld [smem:[#allocation8_spill]]  ;;  %19 = sbr.rel (!%p17_p13) target bundleno = 5 (0x5), region = 93 }
 0x2da   : > { %s2849_s29 = sld [smem:[#allocation9_spill]] }
 0x2db   : > { %s2850_s30 = sld [smem:[#allocation10_spill]] }
 0x2dc   : > { %s2852_s25 = smov %s2845_s14 }
 0x2de   :  { %1501 = vsyncpa [#allocation4], 1 }
 0x2df   :  { %1503 = vsyncpa [#allocation4 + $0x1], 1 }

</bundles_post_ra>
